<compile_context>
chip_gen: v7x
topology: tpu7x:2x2x1
jax: 0.10.0
libtpu: 0.0.40
codegen_flags: <defaults>
</compile_context>

<pallas_src>
import jax
import jax.numpy as jnp
from jax.experimental import pallas as pl
from jax.experimental.pallas import tpu as pltpu


def _attention_kernel(v_ref, w_ref, h_ref, o_ref):
    # v_ref: (B*S, E+1)  flattened values with a trailing ones column (bias fold)
    # w_ref: (E+1, A)    weights with the bias row appended
    # h_ref: (1, A)      location vector
    # o_ref: (B, S)      final, lane-dense output in the input dtype
    B, S = o_ref.shape

    # One dense MXU matmul over all batches; the bias add comes for free via
    # the augmented ones column / bias row.  f32 accumulation.
    sig = jnp.dot(v_ref[...], w_ref[...], preferred_element_type=jnp.float32)  # (B*S, A)
    sig = jnp.maximum(sig, 0.0)

    # Leading-dim-only re-split (minor dim A unchanged -> layout no-op for S a
    # multiple of 8), then h-scale + sum over A as a VPU broadcast-mul + lane
    # reduce.  Result is (B, S) with the sequence axis on lanes.
    sig = sig.reshape(B, S, -1)
    score = jnp.sum(sig * h_ref[...], axis=-1)                                  # (B, S)

    # Per-batch softmax over the sequence axis (now the last / lane axis).
    m = jnp.max(score, axis=-1, keepdims=True)
    e = jnp.exp(score - m)
    denom = jnp.sum(e, axis=-1, keepdims=True)
    # Exact divide (not approx reciprocal) so rows sum to 1 to f32 precision;
    # free at this latency-bound size.  Single lane-dense store in o_ref.dtype.
    o_ref[...] = (e / denom).astype(o_ref.dtype)


def location_based_attention(values, weights, bias, h):
    B, S, E = values.shape
    A = weights.shape[1]

    # Wrapper-side layout plumbing (plain XLA ops, no in-kernel relayout risk):
    #   * flatten batches so one MXU matmul covers all of them,
    #   * fold the bias into the matmul (ones column + bias row) -> one fewer
    #     tiny input DMA and no in-kernel bias add.
    v2d = values.reshape(B * S, E)
    ones = jnp.ones((B * S, 1), values.dtype)
    v_aug = jnp.concatenate([v2d, ones], axis=1)                 # (B*S, E+1)
    w_aug = jnp.concatenate([weights, bias[None, :]], axis=0)    # (E+1, A)
    h_row = h.reshape(1, A)
    # TODO(synk): on v6e/v7x at production shapes, cast v_aug/w_aug/h_row to
    # bf16 here (accumulation stays f32 via preferred_element_type).

    vmem = lambda: pl.BlockSpec(memory_space=pltpu.MemorySpace.VMEM)
    return pl.pallas_call(
        _attention_kernel,
        out_shape=jax.ShapeDtypeStruct((B, S), values.dtype),
        in_specs=[vmem(), vmem(), vmem()],   # whole (tiny) arrays resident in VMEM
        out_specs=vmem(),
    )(v_aug, w_aug, h_row)


def reference(values, weights, bias, h):
    sig = jnp.einsum("bse,ea->bsa", values, weights) + bias
    sig = jnp.maximum(sig, 0.0) * h
    sig = jnp.sum(sig, axis=2)
    return jax.nn.softmax(sig, axis=1)


if __name__ == "__main__":
    B, S, E, A = 2, 8, 32, 16   # batch, seq, emb_dim, att_weight_dim

    key = jax.random.PRNGKey(0)
    k_v, k_w, k_b, k_h = jax.random.split(key, 4)

    # Parameter init matching the module's __init__ (deterministic, synthetic):
    #   weights: xavier_uniform over (emb_dim, att_weight_dim)
    #   bias, h: standard normal over (att_weight_dim,)
    bound = (6.0 / (E + A)) ** 0.5
    weights = jax.random.uniform(k_w, (E, A), jnp.float32, -bound, bound)
    bias = jax.random.normal(k_b, (A,), jnp.float32)
    h = jax.random.normal(k_h, (A,), jnp.float32)

    values = jax.random.normal(k_v, (B, S, E), jnp.float32)

    out = location_based_attention(values, weights, bias, h)
    out = jax.block_until_ready(out)

    ref = reference(values, weights, bias, h)
    assert out.shape == (B, S)
    assert out.dtype == values.dtype
    # Exact-divide softmax: tolerances are f32-tight; any structural bug
    # (wrong softmax axis, missing bias/h) would be orders of magnitude larger.
    assert jnp.allclose(out, ref, atol=1e-5, rtol=1e-4), "mismatch vs reference"
    assert jnp.allclose(jnp.sum(out, axis=1), 1.0, atol=1e-5), "rows must sum to 1"

    print("KERNEL_OK")
</pallas_src>

<mosaic_0001>
module attributes {stable_mosaic.version = 11 : i64} {
  func.func @_attention_kernel(%arg0: memref<16x33xf32, #tpu.memory_space<vmem>>, %arg1: memref<33x16xf32, #tpu.memory_space<vmem>>, %arg2: memref<1x16xf32, #tpu.memory_space<vmem>>, %arg3: memref<2x8xf32, #tpu.memory_space<vmem>>) attributes {dimension_semantics = [], scalar_prefetch = 0 : i64, scratch_operands = 0 : i64, tpu.core_type = #tpu.core_type<tc>} {
    %c0 = arith.constant 0 : index
    %c0_0 = arith.constant 0 : index
    %0 = vector.load %arg0[%c0, %c0_0] : memref<16x33xf32, #tpu.memory_space<vmem>>, vector<16x33xf32>
    %c0_1 = arith.constant 0 : index
    %c0_2 = arith.constant 0 : index
    %1 = vector.load %arg1[%c0_1, %c0_2] : memref<33x16xf32, #tpu.memory_space<vmem>>, vector<33x16xf32>
    %cst = arith.constant dense<0.000000e+00> : vector<16x16xf32>
    %2 = tpu.matmul %0, %1, %cst {dimension_numbers = #tpu.dot_dimension_numbers<[1], [0], [0], [1], [0, 0, 1, 1], [], []>} : vector<16x33xf32>, vector<33x16xf32>, vector<16x16xf32> -> vector<16x16xf32>
    %cst_3 = arith.constant 0.000000e+00 : f32
    %3 = vector.broadcast %cst_3 : f32 to vector<16x16xf32>
    %4 = arith.maximumf %2, %3 : vector<16x16xf32>
    %5 = vector.shape_cast %4 : vector<16x16xf32> to vector<2x8x16xf32>
    %c0_4 = arith.constant 0 : index
    %c0_5 = arith.constant 0 : index
    %6 = vector.load %arg2[%c0_4, %c0_5] : memref<1x16xf32, #tpu.memory_space<vmem>>, vector<1x16xf32>
    %7 = vector.shape_cast %6 : vector<1x16xf32> to vector<1x1x16xf32>
    %8 = vector.broadcast %7 : vector<1x1x16xf32> to vector<2x8x16xf32>
    %9 = arith.mulf %5, %8 : vector<2x8x16xf32>
    %cst_6 = arith.constant dense<0.000000e+00> : vector<2x8xf32>
    %10 = vector.multi_reduction <add>, %9, %cst_6 [2] : vector<2x8x16xf32> to vector<2x8xf32>
    %cst_7 = arith.constant dense<0xFF800000> : vector<2xf32>
    %11 = vector.multi_reduction <maximumf>, %10, %cst_7 [1] : vector<2x8xf32> to vector<2xf32>
    %12 = vector.shape_cast %11 : vector<2xf32> to vector<2x1xf32>
    %13 = vector.broadcast %12 : vector<2x1xf32> to vector<2x8xf32>
    %14 = arith.subf %10, %13 : vector<2x8xf32>
    %15 = math.exp %14 : vector<2x8xf32>
    %cst_8 = arith.constant dense<0.000000e+00> : vector<2xf32>
    %16 = vector.multi_reduction <add>, %15, %cst_8 [1] : vector<2x8xf32> to vector<2xf32>
    %17 = vector.shape_cast %16 : vector<2xf32> to vector<2x1xf32>
    %18 = vector.broadcast %17 : vector<2x1xf32> to vector<2x8xf32>
    %19 = arith.divf %15, %18 : vector<2x8xf32>
    %c0_9 = arith.constant 0 : index
    %c0_10 = arith.constant 0 : index
    %20 = vector.load %arg3[%c0_9, %c0_10] : memref<2x8xf32, #tpu.memory_space<vmem>>, vector<2x8xf32>
    tpu.vector_store %arg3[%c0_9, %c0_10], %19 {strides = array<i32>} : memref<2x8xf32, #tpu.memory_space<vmem>>, vector<2x8xf32>,
    return
  }
}

</mosaic_0001>

<bundles_post_ra>
// kernel: tpu_custom_call.1
= control target key start
LH: loop header
LB: loop body
LE: loop exit
PB: predicated region body
PF: predicated region fallthrough
CT: control target
= control target key end

     0   :  { %vm22_vm0 = vcmask 269312   ;;  %s365_s0 = inlined_call_operand.vmem [shape: f32[16,33], index: 0, kind: input, shape index: {}]   ;;  %s366_s1 = inlined_call_operand.vmem [shape: f32[33,16], index: 1, kind: input, shape index: {}]   ;;  %s367_s2 = inlined_call_operand.vmem [shape: f32[1,16], index: 2, kind: input, shape index: {}]   ;;  %s368_s3 = inlined_call_operand.hbm [shape: f32[2,8], index: 3, kind: output, shape index: {}]  }
   0x1   :  { %v17_v0 = vld [vmem:[%s366_s1] sm:$0xff]  ;;  %v18_v1 = vld [vmem:[%s366_s1 + $0x8] sm:$0xff]  ;;  %v19_v2 = vld [vmem:[%s366_s1 + $0x10] sm:$0xff] }
   0x2   :  { %v255_v3 = vpack.c.bf16 %v18_v1, %v17_v0  ;;  %v20_v4 = vld [vmem:[%s366_s1 + $0x18] sm:$0xff]  ;;  %v15_v5 = vld [vmem:[%s365_s0] sm:$0xff] }
   0x3   :  { %v259_v6 = vpack.c.bf16 %v20_v4, %v19_v2  ;;  %252 = vmatprep.mubr.msk.f32.mxu0 %vm22_vm0, %v15_v5 }
   0x4   :  { %8 = vsyncpa [#allocation3], 0  ;;  %256 = vmatprep.subr.bf16.mxu0 %v255_v3  ;;  %v21_v7 = vld [vmem:[%s366_s1 + $0x20] sm:$0x1]  ;;  %vm29_vm1 = vcmask 1040384   ;;  %v16_v8 = vld [vmem:[%s365_s0 + $0x8] sm:$0xff]  ;;  %v128_v18 = vlaneseq }
   0x5   :  { %258 = vmatpush3.bf16.msra.mxu0 %v255_v3  ;;  %v234_v11 = vld [vmem:[%s367_s2] ss:$0 sm:$0xff]  ;;  %vm119_vm2 = vcmask 130048   ;;  %vm138_vm3 = vcmask 1041409   ;;  %vm141_vm4 = vcmask 58368   ;;  %v299_v28 = vmov 0  }
   0x6   :  { %260 = vmatprep.subr.bf16.mxu0 %v259_v6  ;;  %v129_v19 = vand.u32 127, %v128_v18  ;;  %v131_v20 = vshrl.u32 %v128_v18, 7  ;;  %266 = vset.pattern.permute.xlu0 %v299_v28  ;;  %s300_s0 = smov [#allocation2]  }
   0x7   :  { %265 = vset.pattern.permute.xlu1 %v299_v28  ;;  %s223_s1 = sshll.u32 %s300_s0, 4  ;;  %s224_s1 = int_to_ptr.vmem [resolvable:$true] %s223_s1 }
   0x8   :  { %v132_v22 = vsub.s32 %v129_v19, %v131_v20  ;;  %v148_v29 = vsub.s32 0, %v131_v20  ;;  %v152_v30 = vsub.s32 1, %v131_v20  ;;  %s275_s2 = scalar_lea.vmem %s224_s1, 32  ;;  %p280_p1 = scmp.lt.s32.totalorder %s224_s1, %s224_s1 }
   0x9   :  { %262 = vmatpush3.bf16.msra.mxu0 %v259_v6  ;;  %p276_p0 = scmp.ne.s32.totalorder %s224_s1, %s275_s2  ;;  %p281_p2 = scmp.lt.s32.totalorder %s275_s2, %s275_s2 }
   0xa   :  { %250 = vmatprep.subr.msk.mxu0 %vm29_vm1, %v21_v7 }
   0xb   :  { %p282_p3 = por %p281_p2, %p280_p1 }
   0xd   :  { %251 = vmatpush3.msk.msra.mxu0 %vm29_vm1, %v21_v7  ;;  %p283_p4 = pnand %p282_p3, %p276_p0 }
   0xe   :  { %253 = vmatmul.mubr.msk.f32.vlgmr.msra.gmra.mrb[0].mxu0 %vm22_vm0, %v16_v8 }
  0xe1   :  { %v254_v9 = vpop.f32.mrb[0].mxu0 }
  0xe2   :  { %v99_v10 = vpop.f32.mrb[1].mxu0  ;;  %v109_v12 = vmax.f32 %v254_v9, 0.0 }
  0xe3   :  { %v108_v13 = vmax.f32 %v99_v10, 0.0 }
  0xe4   :  { %v118_v16 = vmul.f32 %v234_v11, %v109_v12 }
  0xe5   :  { %v117_v14 = vmul.f32 %v234_v11, %v108_v13 }
  0xe6   :  { %v123_v17 = vsel %vm119_vm2, %v118_v16, 0.0 }
  0xe7   :  { %v120_v15 = vsel %vm119_vm2, %v117_v14, 0.0 }
  0xe8   :  { %121 = vadd.xlane.f32.xlu0 %v120_v15 }
  0xec   :  { %124 = vadd.xlane.f32.xlu0 %v123_v17 }
 0x175   :  { %v122_v21 = vpop.xlane.xlu0 %121 }
 0x176   :  { %v133_v24 = vrot.slane %v122_v21, %v132_v22 }
 0x179   :  { %v125_v23 = vpop.xlane.xlu0 %124 }
 0x17a   :  { %v137_v25 = vrot.slane %v125_v23, %v132_v22 }
 0x17c   :  { %v139_v26 = vsel %vm138_vm3, %v137_v25, %v133_v24 }
 0x17d   :  { %v142_v27 = vsel %vm141_vm4, %v139_v26, -inf }
 0x17e   :  { %143 = vmax.xlane.f32.xlu1 %v142_v27 }
 0x20b   :  { %v144_v31 = vpop.xlane.xlu1 %143 }
 0x20c   :  { %v149_v32 = vrot.slane %v144_v31, %v148_v29  ;;  %v153_v33 = vrot.slane %v144_v31, %v152_v30 }
 0x20e   :  { %v156_v34 = vsub.f32 %v122_v21, %v149_v32  ;;  %v157_v35 = vsub.f32 %v125_v23, %v153_v33 }
 0x210   :  { %v158_v36 = vmul.f32 1.442695, %v156_v34  ;;  %v160_v37 = vmul.f32 1.442695, %v157_v35 }
 0x212   :  { %267 = vpow2.f32 %v158_v36 }
 0x213   :  { %269 = vpow2.f32 %v160_v37 }
 0x21c   :  { %v268_v38 = vpop.eup %267 }
 0x21d   :  { %v270_v39 = vpop.eup %269  ;;  %165 = vperm.xlu1 %265, %v268_v38  }
 0x21e   :  { %168 = vperm.xlu0 %266, %v270_v39  }
 0x29c   :  { %v166_v40 = vpop.permute.xlu1 %165 }
 0x29d   :  { %v169_v41 = vpop.permute.xlu0 %168  ;;  %v173_v42 = vrot.slane %v166_v40, %v132_v22 }
 0x29e   :  { %v177_v43 = vrot.slane %v169_v41, %v132_v22 }
 0x2a0   :  { %v178_v44 = vsel %vm138_vm3, %v177_v43, %v173_v42 }
 0x2a1   :  { %v180_v45 = vsel %vm141_vm4, %v178_v44, 0.0 }
 0x2a2   :  { %181 = vadd.xlane.f32.xlu1 %v180_v45 }
 0x32f   :  { %v182_v46 = vpop.xlane.xlu1 %181 }
 0x330   :  { %v187_v47 = vrot.slane %v182_v46, %v148_v29  ;;  %v191_v48 = vrot.slane %v182_v46, %v152_v30 }
 0x332   :  { %271 = vrcp.f32 %v187_v47 }
 0x333   :  { %273 = vrcp.f32 %v191_v48 }
 0x33c   :  { %v272_v49 = vpop.eup %271 }
 0x33d   :  { %v195_v50 = vmul.f32 %v272_v49, %v268_v38  ;;  %v274_v51 = vpop.eup %273 }
 0x33e   :  { %v197_v52 = vmul.f32 %v274_v51, %v270_v39 }
 0x33f   :  { %201 = vperm.xlu0 %266, %v195_v50  }
 0x343   :  { %204 = vperm.xlu0 %266, %v197_v52  }
 0x3be   :  { %v202_v53 = vpop.permute.xlu0 %201 }
 0x3bf   :  { %v209_v55 = vrot.slane %v202_v53, %v132_v22 }
 0x3c2   :  { %v205_v54 = vpop.permute.xlu0 %204 }
 0x3c3   :  { %v213_v56 = vrot.slane %v205_v54, %v132_v22 }
 0x3c5   :  { %v214_v57 = vsel %vm138_vm3, %v213_v56, %v209_v55 }
 0x3c6   :  { %216 = vst.msk [vmem:[#allocation2] sm:$0x3] %vm141_vm4, %v214_v57 }
 0x3c7   :  { %286 = shalt.err (!%p283_p4)
}
 0x3c8   :  { %s287_s30 = scalar_lea.hbm %s368_s3, 32 }
 0x3c9   :  { %p288_p5 = scmp.ne.s32.totalorder %s368_s3, %s287_s30  ;;  %p291_p6 = scmp.lt.u32.totalorder %s287_s30, %s368_s3 }
 0x3cb   :  { %p293_p7 = pnand %p291_p6, %p288_p5 }
 0x3cd   :  { %296 = shalt.err (!%p293_p7)
}
 0x3ce   :  { %226 = dma.vmem_to_hbm [thread:$0]  %s224_s1, 32, %s368_s3, [#allocation3]  }
 0x3cf   :  { %297 = dma.done.wait [#allocation3], 32  }
 0x3d0   :  { %298 = vsyncadd [#allocation3], 4294967264 }
 0x3d1   :  { %230 = vsyncpa [#allocation3], 1 }

</bundles_post_ra>
